<compile_context>
chip_gen: v5e
topology: v5e:2x2
jax: 0.10.0
libtpu: 0.0.40
codegen_flags: <defaults>
</compile_context>

<pallas_src>
import functools

import jax
import jax.numpy as jnp
from jax.experimental import pallas as pl
from jax.experimental.pallas import tpu as pltpu


_POOL_CHUNK = 2048              # max lanes up-cast to f32 at once in the pool
_TARGET_BLOCK_BYTES = 8 << 20   # ~HBM-roofline block size per in/out buffer
_VMEM_HEADROOM = 2 << 20        # weights, pooled/scale, compiler scratch
_HW_TILE = 128                  # lane granularity for the HW-tiled fallback


def _cdiv(a, b):
    return -(-a // b)


# -----------------------------------------------------------------------------
# Hardware queries (generation-aware, with safe fallbacks).
# -----------------------------------------------------------------------------
def _vmem_capacity_bytes():
    try:
        cap = int(pltpu.get_tpu_info().vmem_capacity_bytes)
        if cap > 0:
            return cap
    except Exception:
        pass
    return 64 << 20    # conservative: v7x per-core VMEM


def _num_tensorcores():
    try:
        info = pltpu.get_tpu_info()
        for attr in ("num_cores", "core_count", "num_tensorcores"):
            v = getattr(info, attr, None)
            if isinstance(v, int) and v > 0:
                return v
    except Exception:
        pass
    try:
        kind = jax.devices()[0].device_kind.lower()
        if "v7" in kind or "v4" in kind:     # 2 TensorCores behind one device
            return 2
    except Exception:
        pass
    return 1


# -----------------------------------------------------------------------------
# Single-pass kernel: whole (Nb, C, HW) image block per grid step.
# -----------------------------------------------------------------------------
def _se_kernel(x_ref, w1t_ref, w2t_ref, o_ref):
    # x_ref: (Nb, C, HW); w1t_ref: (C, SQ) f32; w2t_ref: (SQ, C) f32.
    nb, c, hw = x_ref.shape

    # Squeeze: global average pool, accumulated in f32 one lane-chunk at a time
    # (bounds the f32 temporary instead of up-casting the whole tile).
    pooled = jnp.zeros((nb, c), jnp.float32)
    off = 0
    while off < hw:                       # static (trace-time) chunk loop
        size = min(_POOL_CHUNK, hw - off)
        pooled = pooled + jnp.sum(
            x_ref[:, :, off:off + size].astype(jnp.float32), axis=-1)
        off += size
    pooled = pooled * (1.0 / hw)

    # Excitation: fc1 -> ReLU -> fc2 -> sigmoid (tiny f32 matmuls).
    h = jnp.maximum(
        jnp.dot(pooled, w1t_ref[...], preferred_element_type=jnp.float32), 0.0)
    s = jax.nn.sigmoid(
        jnp.dot(h, w2t_ref[...], preferred_element_type=jnp.float32))

    # Scale: bulk multiply stays in the input dtype (bf16 keeps bf16 traffic).
    x = x_ref[...]
    o_ref[...] = (x * s[:, :, None].astype(x.dtype)).astype(o_ref.dtype)


def _single_pass_bytes_per_image(c, hw, itemsize):
    # 2 in + 2 out double buffers, the x*s product, and the f32 pool chunk.
    return 5 * c * hw * itemsize + c * min(hw, _POOL_CHUNK) * 4


def _plan_batch_grid(n, c, hw, itemsize, budget, num_cores, max_block_bytes):
    per_image = c * hw * itemsize
    per_image_fp = _single_pass_bytes_per_image(c, hw, itemsize)

    nb_fit = max(1, (budget - _VMEM_HEADROOM) // per_image_fp)
    nb_target = max(1, max_block_bytes // per_image)
    nb = int(min(nb_fit, nb_target, n))

    steps = _cdiv(n, nb)

    # Keep enough grid steps for (a) megacore sharding and (b) overlap of the
    # step-i writeback with the step-(i+1) read once the tensor is large.
    min_steps = 1
    if num_cores > 1 and n >= num_cores:
        min_steps = num_cores
    if n >= 4 and n * per_image >= 4 * max_block_bytes:
        min_steps = max(min_steps, 4)
    if steps < min_steps:
        steps = min_steps
        nb = _cdiv(n, steps)
        steps = _cdiv(n, nb)

    # v7x megacore: the batch axis is sharded across TensorCores -> make the
    # step count a multiple of the core count (padding covers the overhang).
    if num_cores > 1 and n >= num_cores:
        steps = _cdiv(steps, num_cores) * num_cores
        nb = _cdiv(n, steps)
        steps = _cdiv(_cdiv(n, nb), num_cores) * num_cores

    padded_n = nb * steps
    return int(nb), int(steps), int(padded_n)


def _se_single_pass(x_flat, w1t, w2t, budget, num_cores, max_block_bytes):
    n, c, hw = x_flat.shape
    sq = w1t.shape[1]
    itemsize = x_flat.dtype.itemsize
    nb, steps, padded_n = _plan_batch_grid(
        n, c, hw, itemsize, budget, num_cores, max_block_bytes)
    if padded_n != n:
        x_flat = jnp.pad(x_flat, ((0, padded_n - n), (0, 0), (0, 0)))

    out = pl.pallas_call(
        _se_kernel,
        out_shape=jax.ShapeDtypeStruct((padded_n, c, hw), x_flat.dtype),
        grid_spec=pltpu.PrefetchScalarGridSpec(
            num_scalar_prefetch=0,
            grid=(steps,),
            in_specs=[
                pl.BlockSpec((nb, c, hw), lambda b: (b, 0, 0)),
                pl.BlockSpec((c, sq), lambda b: (0, 0)),
                pl.BlockSpec((sq, c), lambda b: (0, 0)),
            ],
            out_specs=pl.BlockSpec((nb, c, hw), lambda b: (b, 0, 0)),
        ),
        compiler_params=pltpu.CompilerParams(
            dimension_semantics=("parallel",),
            vmem_limit_bytes=int(budget),
        ),
    )(x_flat, w1t, w2t)
    return out[:n] if padded_n != n else out


# -----------------------------------------------------------------------------
# Two-pass HW-tiled fallback (one image block too large for VMEM, v7x first).
# -----------------------------------------------------------------------------
def _se_pool_kernel(x_ref, w1t_ref, w2t_ref, scale_ref, acc_ref, *, inv_hw):
    # Grid: (batch "parallel", HW "arbitrary").  acc_ref: (1, C) f32 scratch.
    h_idx = pl.program_id(1)

    @pl.when(h_idx == 0)
    def _():
        acc_ref[...] = jnp.zeros_like(acc_ref)

    acc_ref[...] += jnp.sum(x_ref[...].astype(jnp.float32), axis=-1)

    @pl.when(h_idx == pl.num_programs(1) - 1)
    def _():
        pooled = acc_ref[...] * inv_hw
        h = jnp.maximum(
            jnp.dot(pooled, w1t_ref[...], preferred_element_type=jnp.float32),
            0.0)
        s = jax.nn.sigmoid(
            jnp.dot(h, w2t_ref[...], preferred_element_type=jnp.float32))
        scale_ref[...] = s[:, :, None]


def _se_scale_kernel(x_ref, s_ref, o_ref):
    x = x_ref[...]
    o_ref[...] = (x * s_ref[...].astype(x.dtype)).astype(o_ref.dtype)


def _se_two_pass(x_flat, w1t, w2t, budget, max_block_bytes):
    n, c, hw = x_flat.shape
    sq = w1t.shape[1]
    itemsize = x_flat.dtype.itemsize

    # HW tile (multiple of 128).  Per-lane footprint at nb=1: 2 in + 2 out
    # double buffers + product temp (5x input bytes) + the f32 pool temp.
    per_lane = c * itemsize
    per_lane_fp = 5 * per_lane + c * 4
    hw_t = min((budget - _VMEM_HEADROOM) // per_lane_fp,
               max(1, max_block_bytes // per_lane),
               hw)
    hw_t = max(_HW_TILE, (hw_t // _HW_TILE) * _HW_TILE)
    if hw_t * per_lane_fp + _VMEM_HEADROOM > budget:
        raise ValueError("SqueezeAndExcitation image too large for VMEM even "
                         "with 128-lane HW tiling (C is too big).")
    hw_steps = int(_cdiv(hw, hw_t))
    padded_hw = hw_t * hw_steps
    if padded_hw != hw:
        # Zero padding is neutral for the pooled sum; we divide by the true hw.
        x_flat = jnp.pad(x_flat, ((0, 0), (0, 0), (0, padded_hw - hw)))

    # Pass 1: accumulate the pool over HW tiles, excitation at the final step.
    scale = pl.pallas_call(
        functools.partial(_se_pool_kernel, inv_hw=1.0 / hw),
        out_shape=jax.ShapeDtypeStruct((n, c, 1), jnp.float32),
        grid_spec=pltpu.PrefetchScalarGridSpec(
            num_scalar_prefetch=0,
            grid=(n, hw_steps),
            in_specs=[
                pl.BlockSpec((1, c, hw_t), lambda b, h: (b, 0, h)),
                pl.BlockSpec((c, sq), lambda b, h: (0, 0)),
                pl.BlockSpec((sq, c), lambda b, h: (0, 0)),
            ],
            out_specs=pl.BlockSpec((1, c, 1), lambda b, h: (b, 0, 0)),
            scratch_shapes=[pltpu.VMEM((1, c), jnp.float32)],
        ),
        compiler_params=pltpu.CompilerParams(
            dimension_semantics=("parallel", "arbitrary"),
            vmem_limit_bytes=int(budget),
        ),
    )(x_flat, w1t, w2t)

    # Pass 2: stream the scale multiply over the same tiles.
    out = pl.pallas_call(
        _se_scale_kernel,
        out_shape=jax.ShapeDtypeStruct((n, c, padded_hw), x_flat.dtype),
        grid_spec=pltpu.PrefetchScalarGridSpec(
            num_scalar_prefetch=0,
            grid=(n, hw_steps),
            in_specs=[
                pl.BlockSpec((1, c, hw_t), lambda b, h: (b, 0, h)),
                pl.BlockSpec((1, c, 1), lambda b, h: (b, 0, 0)),
            ],
            out_specs=pl.BlockSpec((1, c, hw_t), lambda b, h: (b, 0, h)),
        ),
        compiler_params=pltpu.CompilerParams(
            dimension_semantics=("parallel", "parallel"),
            vmem_limit_bytes=int(budget),
        ),
    )(x_flat, scale)

    return out[:, :, :hw] if padded_hw != hw else out


# -----------------------------------------------------------------------------
# Public wrapper.
# -----------------------------------------------------------------------------
def squeeze_and_excitation(x_nchw, w1, w2, *, force_two_pass=False,
                           max_block_bytes=_TARGET_BLOCK_BYTES):
    """x_nchw: (N, C, H, W); w1: (SQ, C, 1, 1); w2: (C, SQ, 1, 1)."""
    n, c, h, w = x_nchw.shape
    hw = h * w
    sq = w1.shape[0]

    x_flat = x_nchw.reshape(n, c, hw)
    # Hoist the weight transposes/casts out of the kernel; the constant
    # index_map keeps these tiny buffers VMEM-resident across grid steps.
    w1t = w1.reshape(sq, c).T.astype(jnp.float32)     # (C, SQ)
    w2t = w2.reshape(c, sq).T.astype(jnp.float32)     # (SQ, C)

    # One generation-aware VMEM number drives both block sizing and the
    # compiler's scoped-VMEM limit (~96 MiB on v5e/v6e, ~48 MiB on v7x).
    budget = (3 * _vmem_capacity_bytes()) // 4
    num_cores = _num_tensorcores()
    itemsize = x_flat.dtype.itemsize

    fits_single = (_single_pass_bytes_per_image(c, hw, itemsize)
                   + _VMEM_HEADROOM <= budget)
    if fits_single and not force_two_pass:
        out_flat = _se_single_pass(x_flat, w1t, w2t, budget, num_cores,
                                   max_block_bytes)
    else:
        out_flat = _se_two_pass(x_flat, w1t, w2t, budget, max_block_bytes)
    return out_flat.reshape(n, c, h, w)


def _reference(x, w1, w2):
    # Pure-JAX reference mirroring the PyTorch forward.
    pooled = jnp.mean(x, axis=(2, 3), keepdims=True)               # (N,C,1,1)
    h = jnp.einsum("sc,ncij->nsij", w1.reshape(w1.shape[0], -1), pooled)
    h = jnp.maximum(h, 0.0)
    s = jnp.einsum("cs,nsij->ncij", w2.reshape(w2.shape[0], -1), h)
    return jax.nn.sigmoid(s) * x


if __name__ == "__main__":
    # Module hyperparameters: in_channels=16, reduction_rate=4 -> sq_channels=4
    # (sq_channels must equal reduction_rate for the original module's fc2 to
    #  be shape-consistent).
    in_channels, reduction_rate = 16, 4
    sq_channels = in_channels // reduction_rate
    N, H, W = 8, 16, 16

    key = jax.random.PRNGKey(0)
    kx, k1, k2 = jax.random.split(key, 3)

    x = jax.random.normal(kx, (N, in_channels, H, W), dtype=jnp.float32)
    # Deterministic synthetic weights (Conv2d kernel_size=1, bias=False).
    w1 = jax.random.normal(k1, (sq_channels, in_channels, 1, 1),
                           dtype=jnp.float32) * 0.25
    w2 = jax.random.normal(k2, (in_channels, reduction_rate, 1, 1),
                           dtype=jnp.float32) * 0.25

    ref = _reference(x, w1, w2)

    # Default (single-pass) path.
    out = jax.block_until_ready(squeeze_and_excitation(x, w1, w2))
    assert jnp.allclose(out, ref, atol=1e-5, rtol=1e-5), "single-pass mismatch"

    # Also exercise the two-pass HW-tiled fallback (the path used when a
    # single image block exceeds the VMEM budget, e.g. on v7x's 64 MiB VMEM).
    out2 = jax.block_until_ready(
        squeeze_and_excitation(x, w1, w2, force_two_pass=True,
                               max_block_bytes=8 * 1024))
    assert jnp.allclose(out2, ref, atol=1e-5, rtol=1e-5), "two-pass mismatch"

    print("KERNEL_OK")
</pallas_src>

<mosaic_0001>
module attributes {stable_mosaic.version = 11 : i64} {
  func.func @_se_kernel(%arg0: i32, %arg1: memref<8x16x256xf32, #tpu.memory_space<vmem>>, %arg2: memref<16x4xf32, #tpu.memory_space<vmem>>, %arg3: memref<4x16xf32, #tpu.memory_space<vmem>>, %arg4: memref<8x16x256xf32, #tpu.memory_space<vmem>>) attributes {dimension_semantics = [#tpu.dimension_semantics<parallel>], iteration_bounds = array<i64: 1>, scalar_prefetch = 0 : i64, scratch_operands = 0 : i64, tpu.core_type = #tpu.core_type<tc>, window_params = [{transform_indices = @transform_0, window_bounds = array<i64: 8, 16, 256>}, {pipeline_mode = #tpu.pipeline_mode<synchronous>, transform_indices = @transform_1, window_bounds = array<i64: 16, 4>}, {pipeline_mode = #tpu.pipeline_mode<synchronous>, transform_indices = @transform_2, window_bounds = array<i64: 4, 16>}, {transform_indices = @transform_3, window_bounds = array<i64: 8, 16, 256>}]} {
    %cst = arith.constant 0.000000e+00 : f32
    %0 = vector.broadcast %cst : f32 to vector<8x16xf32>
    %c0 = arith.constant 0 : index
    %c0_0 = arith.constant 0 : index
    %c0_1 = arith.constant 0 : index
    %1 = vector.load %arg1[%c0, %c0_0, %c0_1] : memref<8x16x256xf32, #tpu.memory_space<vmem>>, vector<8x16x256xf32>
    %cst_2 = arith.constant dense<0.000000e+00> : vector<8x16xf32>
    %2 = vector.multi_reduction <add>, %1, %cst_2 [2] : vector<8x16x256xf32> to vector<8x16xf32>
    %3 = arith.addf %0, %2 : vector<8x16xf32>
    %cst_3 = arith.constant 3.906250e-03 : f32
    %4 = vector.broadcast %cst_3 : f32 to vector<8x16xf32>
    %5 = arith.mulf %3, %4 : vector<8x16xf32>
    %c0_4 = arith.constant 0 : index
    %c0_5 = arith.constant 0 : index
    %6 = vector.load %arg2[%c0_4, %c0_5] : memref<16x4xf32, #tpu.memory_space<vmem>>, vector<16x4xf32>
    %cst_6 = arith.constant dense<0.000000e+00> : vector<8x4xf32>
    %7 = tpu.matmul %5, %6, %cst_6 {dimension_numbers = #tpu.dot_dimension_numbers<[1], [0], [0], [1], [0, 0, 1, 1], [], []>} : vector<8x16xf32>, vector<16x4xf32>, vector<8x4xf32> -> vector<8x4xf32>
    %cst_7 = arith.constant 0.000000e+00 : f32
    %8 = vector.broadcast %cst_7 : f32 to vector<8x4xf32>
    %9 = arith.maximumf %7, %8 : vector<8x4xf32>
    %c0_8 = arith.constant 0 : index
    %c0_9 = arith.constant 0 : index
    %10 = vector.load %arg3[%c0_8, %c0_9] : memref<4x16xf32, #tpu.memory_space<vmem>>, vector<4x16xf32>
    %cst_10 = arith.constant dense<0.000000e+00> : vector<8x16xf32>
    %11 = tpu.matmul %9, %10, %cst_10 {dimension_numbers = #tpu.dot_dimension_numbers<[1], [0], [0], [1], [0, 0, 1, 1], [], []>} : vector<8x4xf32>, vector<4x16xf32>, vector<8x16xf32> -> vector<8x16xf32>
    %12 = arith.negf %11 : vector<8x16xf32>
    %13 = math.exp %12 : vector<8x16xf32>
    %cst_11 = arith.constant 1.000000e+00 : f32
    %14 = vector.broadcast %cst_11 : f32 to vector<8x16xf32>
    %15 = arith.addf %14, %13 : vector<8x16xf32>
    %16 = arith.divf %14, %15 : vector<8x16xf32>
    %c0_12 = arith.constant 0 : index
    %c0_13 = arith.constant 0 : index
    %c0_14 = arith.constant 0 : index
    %17 = vector.load %arg1[%c0_12, %c0_13, %c0_14] : memref<8x16x256xf32, #tpu.memory_space<vmem>>, vector<8x16x256xf32>
    %18 = vector.shape_cast %16 : vector<8x16xf32> to vector<8x16x1xf32>
    %19 = vector.broadcast %18 : vector<8x16x1xf32> to vector<8x16x256xf32>
    %20 = arith.mulf %17, %19 : vector<8x16x256xf32>
    %c0_15 = arith.constant 0 : index
    %c0_16 = arith.constant 0 : index
    %c0_17 = arith.constant 0 : index
    %21 = vector.load %arg4[%c0_15, %c0_16, %c0_17] : memref<8x16x256xf32, #tpu.memory_space<vmem>>, vector<8x16x256xf32>
    tpu.vector_store %arg4[%c0_15, %c0_16, %c0_17], %20 {strides = array<i32>} : memref<8x16x256xf32, #tpu.memory_space<vmem>>, vector<8x16x256xf32>,
    return
  }
  func.func @transform_0(%arg0: i32) -> (i32, i32, i32) {
    %c0_i32 = arith.constant 0 : i32
    %c0_i32_0 = arith.constant 0 : i32
    %c0_i32_1 = arith.constant 0 : i32
    return %arg0, %c0_i32, %c0_i32_0 : i32, i32, i32
  }
  func.func @transform_1(%arg0: i32) -> (i32, i32) {
    %c0_i32 = arith.constant 0 : i32
    %c0_i32_0 = arith.constant 0 : i32
    %c0_i32_1 = arith.constant 0 : i32
    return %c0_i32, %c0_i32_0 : i32, i32
  }
  func.func @transform_2(%arg0: i32) -> (i32, i32) {
    %c0_i32 = arith.constant 0 : i32
    %c0_i32_0 = arith.constant 0 : i32
    %c0_i32_1 = arith.constant 0 : i32
    return %c0_i32, %c0_i32_0 : i32, i32
  }
  func.func @transform_3(%arg0: i32) -> (i32, i32, i32) {
    %c0_i32 = arith.constant 0 : i32
    %c0_i32_0 = arith.constant 0 : i32
    %c0_i32_1 = arith.constant 0 : i32
    return %arg0, %c0_i32, %c0_i32_0 : i32, i32, i32
  }
}

</mosaic_0001>

<bundles_post_ra>
// kernel: tpu_custom_call.1
= control target key start
LH: loop header
LB: loop body
LE: loop exit
PB: predicated region body
PF: predicated region fallthrough
CT: control target
= control target key end

     0   :  { %8 = vsyncpa [#allocation3], 0  ;;  %s730_s0 = inlined_call_operand.hbm [shape: f32[8,16,256], index: 0, kind: input, shape index: {}]   ;;  %s731_s1 = inlined_call_operand.vmem [shape: f32[16,4], index: 1, kind: input, shape index: {}]   ;;  %s732_s2 = inlined_call_operand.vmem [shape: f32[4,16], index: 2, kind: input, shape index: {}]   ;;  %s733_s3 = inlined_call_operand.hbm [shape: f32[8,16,256], index: 3, kind: output, shape index: {}]  }
   0x1   :  { %9 = vsyncpa [#allocation4], 0  ;;  %s14_s14 = sshll.u32 %s730_s0, 4  ;;  %s535_s15 = smov [#allocation2]   ;;  %s15_s14 = int_to_ptr.hbm [resolvable:$true] %s14_s14 }
   0x2   :  { %s16_s16 = sshll.u32 %s535_s15, 4  ;;  %s536_s17 = smov 256   ;;  %s17_s16 = int_to_ptr.vmem [resolvable:$true] %s16_s16 }
   0x3   :  { %s537_s18 = smov 16  }
   0x4   :  { %22 = dma.hbm_to_vmem [thread:$0]  %s15_s14, 4096, %s17_s16, [#allocation3], %s536_s17, %s536_s17, %s537_s18  }
   0x5   :  { %531 = dma.done.wait [#allocation3], 4096  }
   0x6   :  { %532 = vsyncadd [#allocation3], 4294963200  ;;  %v565_v0 = vld [vmem:[#allocation2 + $0x40] sm:$0xff]  ;;  %v567_v1 = vld [vmem:[#allocation2 + $0x48] sm:$0xff]  ;;  %v161_v59 = vlaneseq  ;;  %vm166_vm0 = vcmask 130112   ;;  %vm189_vm1 = vcmask 1041409  }
   0x7   :  { %v569_v2 = vld [vmem:[#allocation2 + $0x20] sm:$0xff]  ;;  %v75_v3 = vadd.f32 %v567_v1, %v565_v0  ;;  %v573_v4 = vld [vmem:[#allocation2 + $0x28] sm:$0xff]  ;;  %v583_v9 = vld [vmem:[#allocation2 + $0x50] sm:$0xff]  ;;  %vm191_vm2 = vcmask 1042434   ;;  %vm193_vm3 = vcmask 1043459   ;;  %vm195_vm4 = vcmask 1044484  }
   0x8   :  { %v575_v5 = vld [vmem:[#allocation2] sm:$0xff]  ;;  %v577_v6 = vld [vmem:[#allocation2 + $0x8] sm:$0xff]  ;;  %v69_v7 = vadd.f32 %v573_v4, %v569_v2  ;;  %v585_v10 = vld [vmem:[#allocation2 + $0x58] sm:$0xff]  ;;  %v668_v60 = vand.u32 127, %v161_v59  ;;  %vm197_vm5 = vcmask 1045509   ;;  %vm199_vm6 = vcmask 1046534  }
   0x9   :  { %v63_v8 = vadd.f32 %v577_v6, %v575_v5  ;;  %76 = vadd.xlane.f32.xlu2 %v75_v3  ;;  %v587_v11 = vld [vmem:[#allocation2 + $0x30] sm:$0xff]  ;;  %v589_v12 = vld [vmem:[#allocation2 + $0x38] sm:$0xff]  ;;  %v78_v15 = vadd.f32 %v585_v10, %v583_v9  ;;  %v603_v19 = vld [vmem:[#allocation2 + $0x80] sm:$0xff]  ;;  %vm201_vm7 = vcmask 1047559   ;;  %vm203_vm8 = vcmask 130048   ;;  %s449_s26 = sshll.u32 %s733_s3, 4  ;;  %s450_s26 = int_to_ptr.hbm [resolvable:$true] %s449_s26 }
   0xa   :  { %70 = vadd.xlane.f32.xlu1 %v69_v7  ;;  %v591_v13 = vld [vmem:[#allocation2 + $0x10] sm:$0xff]  ;;  %v593_v14 = vld [vmem:[#allocation2 + $0x18] sm:$0xff]  ;;  %v72_v16 = vadd.f32 %v589_v12, %v587_v11  ;;  %v605_v20 = vld [vmem:[#allocation2 + $0x88] sm:$0xff]  ;;  %v164_v62 = vadd.s32 4294967288, %v668_v60  ;;  %vm232_vm9 = vcmask 1043456   ;;  %vm228_vm10 = vcmask 31744  }
   0xb   :  { %64 = vadd.xlane.f32.xlu0 %v63_v8  ;;  %v66_v17 = vadd.f32 %v593_v14, %v591_v13  ;;  %v601_v18 = vld [vmem:[#allocation2 + $0x70] sm:$0xff]  ;;  %v607_v21 = vld [vmem:[#allocation2 + $0x78] sm:$0xff]  ;;  %v609_v22 = vld [vmem:[#allocation2 + $0x60] sm:$0xff]  ;;  %v87_v24 = vadd.f32 %v605_v20, %v603_v19 }
   0xc   :  { %v611_v23 = vld [vmem:[#allocation2 + $0x68] sm:$0xff]  ;;  %v84_v25 = vadd.f32 %v607_v21, %v601_v18  ;;  %v619_v27 = vld [vmem:[#allocation2 + $0xa0] sm:$0xff]  ;;  %v621_v28 = vld [vmem:[#allocation2 + $0xb0] sm:$0xff] }
   0xd   :  { %v81_v26 = vadd.f32 %v611_v23, %v609_v22  ;;  %v623_v29 = vld [vmem:[#allocation2 + $0xb8] sm:$0xff]  ;;  %v625_v30 = vld [vmem:[#allocation2 + $0xa8] sm:$0xff]  ;;  %v627_v31 = vld [vmem:[#allocation2 + $0x90] sm:$0xff] }
   0xe   :  { %v629_v32 = vld [vmem:[#allocation2 + $0x98] sm:$0xff]  ;;  %v96_v33 = vadd.f32 %v623_v29, %v621_v28  ;;  %v93_v34 = vadd.f32 %v625_v30, %v619_v27  ;;  %v637_v36 = vld [vmem:[#allocation2 + $0xd0] sm:$0xff]  ;;  %v639_v37 = vld [vmem:[#allocation2 + $0xe0] sm:$0xff] }
   0xf   :  { %v90_v35 = vadd.f32 %v629_v32, %v627_v31  ;;  %v641_v38 = vld [vmem:[#allocation2 + $0xe8] sm:$0xff]  ;;  %v643_v39 = vld [vmem:[#allocation2 + $0xd8] sm:$0xff]  ;;  %v645_v40 = vld [vmem:[#allocation2 + $0xc0] sm:$0xff] }
  0x10   :  { %v647_v41 = vld [vmem:[#allocation2 + $0xc8] sm:$0xff]  ;;  %v105_v42 = vadd.f32 %v641_v38, %v639_v37  ;;  %v102_v43 = vadd.f32 %v643_v39, %v637_v36  ;;  %v655_v45 = vld [vmem:[#allocation2 + $0xf0] sm:$0xff]  ;;  %v657_v46 = vld [vmem:[#allocation2 + $0xf8] sm:$0xff] }
  0x11   :  { %79 = vadd.xlane.f32.xlu2 %v78_v15  ;;  %v99_v44 = vadd.f32 %v647_v41, %v645_v40  ;;  %v108_v47 = vadd.f32 %v657_v46, %v655_v45  ;;  %v144_v54 = vld [vmem:[%s731_s1 + $0x8] sm:$0xff]  ;;  %v143_v55 = vld [vmem:[%s731_s1] sm:$0xff] }
  0x12   :  { %73 = vadd.xlane.f32.xlu1 %v72_v16  ;;  %220 = vmatpush.msra.mxu0 %v144_v54 }
  0x13   :  { %67 = vadd.xlane.f32.xlu0 %v66_v17 }
  0x14   :  { %221 = vmatpush.msra.mxu0 %v143_v55 }
  0x19   :  { %88 = vadd.xlane.f32.xlu2 %v87_v24 }
  0x1a   :  { %85 = vadd.xlane.f32.xlu1 %v84_v25 }
  0x1b   :  { %82 = vadd.xlane.f32.xlu0 %v81_v26 }
  0x21   :  { %97 = vadd.xlane.f32.xlu2 %v96_v33 }
  0x22   :  { %94 = vadd.xlane.f32.xlu1 %v93_v34 }
  0x23   :  { %91 = vadd.xlane.f32.xlu0 %v90_v35 }
  0x29   :  { %106 = vadd.xlane.f32.xlu2 %v105_v42 }
  0x2a   :  { %103 = vadd.xlane.f32.xlu1 %v102_v43 }
  0x2b   :  { %100 = vadd.xlane.f32.xlu0 %v99_v44 }
  0x33   :  { %109 = vadd.xlane.f32.xlu0 %v108_v47 }
  0x7c   :  { %v77_v48 = vpop.xlane.xlu2 %76 }
  0x7d   :  { %v71_v49 = vpop.xlane.xlu1 %70  ;;  %v131_v17 = vmul.f32 0.00390625, %v77_v48 }
  0x7e   :  { %v65_v50 = vpop.xlane.xlu0 %64  ;;  %v129_v61 = vmul.f32 0.00390625, %v71_v49 }
  0x7f   :  { %v127_v15 = vmul.f32 0.00390625, %v65_v50  ;;  %v171_v47 = vperm.slane %v131_v17, %v668_v60 }
  0x80   :  { %v168_v24 = vperm.slane %v129_v61, %v668_v60 }
  0x81   :  { %v163_v42 = vperm.slane %v127_v15, %v668_v60 }
  0x84   :  { %v80_v51 = vpop.xlane.xlu2 %79 }
  0x85   :  { %v74_v52 = vpop.xlane.xlu1 %73  ;;  %v132_v25 = vmul.f32 0.00390625, %v80_v51 }
  0x86   :  { %v68_v53 = vpop.xlane.xlu0 %67  ;;  %v130_v63 = vmul.f32 0.00390625, %v74_v52 }
  0x87   :  { %v128_v3 = vmul.f32 0.00390625, %v68_v53  ;;  %v172_v49 = vperm.slane %v132_v25, %v164_v62 }
  0x88   :  { %v169_v26 = vperm.slane %v130_v63, %v164_v62 }
  0x89   :  { %v165_v33 = vperm.slane %v128_v3, %v164_v62 }
  0x8a   :  { %v170_v50 = vsel %vm166_vm0, %v169_v26, %v168_v24 }
  0x8b   :  { %v167_v48 = vsel %vm166_vm0, %v165_v33, %v163_v42 }
  0x8c   :  { %v89_v56 = vpop.xlane.xlu2 %88  ;;  %v190_v15 = vsel %vm189_vm1, %v170_v50, %v167_v48 }
  0x8d   :  { %v86_v57 = vpop.xlane.xlu1 %85  ;;  %v135_v43 = vmul.f32 0.00390625, %v89_v56 }
  0x8e   :  { %v83_v58 = vpop.xlane.xlu0 %82  ;;  %v134_v34 = vmul.f32 0.00390625, %v86_v57 }
  0x8f   :  { %v133_v35 = vmul.f32 0.00390625, %v83_v58  ;;  %v177_v58 = vperm.slane %v135_v43, %v668_v60 }
  0x90   :  { %v175_v51 = vperm.slane %v134_v34, %v164_v62 }
  0x91   :  { %v174_v54 = vperm.slane %v133_v35, %v668_v60 }
  0x93   :  { %v176_v17 = vsel %vm166_vm0, %v175_v51, %v174_v54 }
  0x94   :  { %v98_v16 = vpop.xlane.xlu2 %97 }
  0x95   :  { %v95_v7 = vpop.xlane.xlu1 %94  ;;  %v138_v57 = vmul.f32 0.00390625, %v98_v16 }
  0x96   :  { %v92_v8 = vpop.xlane.xlu0 %91  ;;  %v137_v55 = vmul.f32 0.00390625, %v95_v7 }
  0x97   :  { %v136_v44 = vmul.f32 0.00390625, %v92_v8  ;;  %v173_v8 = vsel %vm166_vm0, %v172_v49, %v171_v47  ;;  %v181_v25 = vperm.slane %v138_v57, %v164_v62 }
  0x98   :  { %v180_v24 = vperm.slane %v137_v55, %v668_v60  ;;  %v192_v34 = vsel %vm191_vm2, %v173_v8, %v190_v15  ;;  %v227_v55 = vld [vmem:[%s732_s2] sm:$0xf]  ;;  %s538_s2 = smov [#allocation5]  }
  0x99   :  { %v178_v61 = vperm.slane %v136_v44, %v164_v62  ;;  %v194_v35 = vsel %vm193_vm3, %v176_v17, %v192_v34  ;;  %463 = vmatpush.msk.msra.mxu1 %vm232_vm9, %v227_v55  ;;  %s447_s23 = sshll.u32 %s538_s2, 4  ;;  %s448_s23 = int_to_ptr.vmem [resolvable:$true] %s447_s23 }
  0x9a   :  { %v182_v43 = vsel %vm166_vm0, %v181_v25, %v180_v24 }
  0x9b   :  { %v179_v7 = vsel %vm166_vm0, %v178_v61, %v177_v58 }
  0x9c   :  { %v107_v3 = vpop.xlane.xlu2 %106  ;;  %v196_v49 = vsel %vm195_vm4, %v179_v7, %v194_v35 }
  0x9d   :  { %v104_v52 = vpop.xlane.xlu1 %103  ;;  %v141_v26 = vmul.f32 0.00390625, %v107_v3 }
  0x9e   :  { %v101_v53 = vpop.xlane.xlu0 %100  ;;  %v140_v56 = vmul.f32 0.00390625, %v104_v52  ;;  %v198_v52 = vsel %vm197_vm5, %v182_v43, %v196_v49 }
  0x9f   :  { %v139_v63 = vmul.f32 0.00390625, %v101_v53  ;;  %v186_v44 = vperm.slane %v141_v26, %v668_v60 }
  0xa0   :  { %v184_v16 = vperm.slane %v140_v56, %v164_v62 }
  0xa1   :  { %v183_v33 = vperm.slane %v139_v63, %v668_v60 }
  0xa3   :  { %v185_v50 = vsel %vm166_vm0, %v184_v16, %v183_v33 }
  0xa4   :  { %v200_v51 = vsel %vm199_vm6, %v185_v50, %v198_v52 }
  0xa6   :  { %v110_v42 = vpop.xlane.xlu0 %109 }
  0xa7   :  { %v142_v47 = vmul.f32 0.00390625, %v110_v42 }
  0xa9   :  { %v187_v48 = vperm.slane %v142_v47, %v164_v62  ;;  %v277_v62 = vshrl.u32 %v161_v59, 7 }
  0xab   :  { %v188_v53 = vsel %vm166_vm0, %v187_v48, %v186_v44  ;;  %472 = vset.pattern.permute.xlu0 %v277_v62  ;;  %470 = vset.pattern.permute.xlu1 %v277_v62  ;;  %v284_v58 = vadd.s32 8, %v277_v62 }
  0xac   :  { %v202_v54 = vsel %vm201_vm7, %v188_v53, %v200_v51 }
  0xad   :  { %462 = vmatmul.msk.f32.vlgmr.msra.gmra.mxu0 %vm203_vm8, %v202_v54  ;;  %471 = vset.pattern.permute.xlu2 %v284_v58 }
 0x12a   :  { %v223_v60 = vpop.f32.mrf.mxu0 }
 0x12b   :  { %v226_v57 = vmax.f32 %v223_v60, 0.0 }
 0x12d   :  { %464 = vmatmul.msk.f32.vlgmr.msra.gmra.mxu1 %vm228_vm10, %v226_v57 }
 0x1aa   :  { %v253_v61 = vpop.f32.mrf.mxu1 }
 0x1ab   :  { %v465_v56 = vmul.f32 -1.442695, %v253_v61 }
 0x1ad   :  { %479 = vpow2.f32 %v465_v56 }
 0x1b3   :  { %v480_v63 = vpop.eup %479 }
 0x1b4   :  { %v259_v3 = vadd.f32 1.0, %v480_v63 }
 0x1b6   :  { %481 = vrcp.f32 %v259_v3  ;;  %v271_v24 = vand.u32 2147483648, %v259_v3  ;;  %v269_v26 = vand.u32 2147483647, %v259_v3  ;;  %vm265_vm12 = vweird.f32 %v259_v3 }
 0x1b8   :  { %v272_v59 = vor.u32 1.1754944e-38, %v271_v24  ;;  %vm270_vm14 = vcmp.eq.f32.partialorder %v269_v26, 8.507059e+37 }
 0x1bc   :  { %v482_v8 = vpop.eup %481 }
 0x1bd   :  { %v261_v15 = vmul.f32 %v482_v8, %v259_v3  ;;  %vm266_vm11 = vweird.f32 %v482_v8 }
 0x1be   :  { %vm267_vm13 = vmor %vm265_vm12, %vm266_vm11 }
 0x1bf   :  { %v262_v17 = vsub.f32 1.0, %v261_v15 }
 0x1c1   :  { %v263_v25 = vmul.f32 %v482_v8, %v262_v17 }
 0x1c3   :  { %v264_v7 = vadd.f32 %v482_v8, %v263_v25 }
 0x1c5   :  { %v268_v16 = vsel %vm267_vm13, %v482_v8, %v264_v7 }
 0x1c6   :  { %v273_v33 = vsel %vm270_vm14, %v272_v59, %v268_v16 }
 0x1c7   :  { %v288_v34 = vperm.slane %v273_v33, 1  ;;  %v275_v35 = vperm.slane %v273_v33, 0  ;;  %v301_v42 = vperm.slane %v273_v33, 2  ;;  %v327_v43 = vperm.slane %v273_v33, 4 }
 0x1c8   :  { %v314_v44 = vperm.slane %v273_v33, 3  ;;  %v366_v47 = vperm.slane %v273_v33, 7  ;;  %v340_v49 = vperm.slane %v273_v33, 5  ;;  %v353_v50 = vperm.slane %v273_v33, 6 }
 0x1c9   :  { %293 = vperm.xlu0 %472, %v288_v34   ;;  %286 = vperm.xlu2 %471, %v275_v35  }
 0x1ca   :  { %280 = vperm.xlu1 %470, %v275_v35  }
 0x1d1   :  { %473 = vset.pattern.permute.xlu0 %v284_v58  ;;  %299 = vperm.xlu2 %471, %v288_v34  }
 0x1d2   :  { %306 = vperm.xlu1 %470, %v301_v42  }
 0x1d9   :  { %338 = vperm.xlu0 %473, %v327_v43   ;;  %312 = vperm.xlu2 %471, %v301_v42  }
 0x1da   :  { %319 = vperm.xlu1 %470, %v314_v44  }
 0x1e1   :  { %476 = vset.pattern.permute.xlu0 %v277_v62  ;;  %325 = vperm.xlu2 %471, %v314_v44  }
 0x1e2   :  { %332 = vperm.xlu1 %470, %v327_v43  }
 0x1e9   :  { %371 = vperm.xlu0 %476, %v366_v47   ;;  %474 = vset.pattern.permute.xlu2 %v277_v62 }
 0x1ea   :  { %475 = vset.pattern.permute.xlu1 %v284_v58 }
 0x1f1   :  { %345 = vperm.xlu2 %474, %v340_v49   ;;  %478 = vset.pattern.permute.xlu0 %v284_v58 }
 0x1f2   :  { %351 = vperm.xlu1 %475, %v340_v49  }
 0x1f9   :  { %358 = vperm.xlu2 %474, %v353_v50  }
 0x1fa   :  { %364 = vperm.xlu1 %475, %v353_v50  }
 0x201   :  { %477 = vset.pattern.permute.xlu2 %v284_v58 }
 0x209   :  { %377 = vperm.xlu2 %477, %v366_v47  }
 0x223   :  { %v287_v48 = vpop.permute.xlu2 %286 }
 0x224   :  { %v381_v52 = vmul.f32 %v287_v48, %v591_v13  ;;  %v382_v53 = vmul.f32 %v287_v48, %v593_v14 }
 0x226   :  { %413 = vst [vmem:[#allocation5 + $0x10] sm:$0xff] %v381_v52 }
 0x227   :  { %414 = vst [vmem:[#allocation5 + $0x18] sm:$0xff] %v382_v53 }
 0x22b   :  { %v300_v51 = vpop.permute.xlu2 %299 }
 0x22c   :  { %v385_v54 = vmul.f32 %v300_v51, %v587_v11  ;;  %v386_v55 = vmul.f32 %v300_v51, %v589_v12 }
 0x22e   :  { %417 = vst [vmem:[#allocation5 + $0x30] sm:$0xff] %v385_v54 }
 0x22f   :  { %418 = vst [vmem:[#allocation5 + $0x38] sm:$0xff] %v386_v55 }
 0x233   :  { %v313_v60 = vpop.permute.xlu2 %312 }
 0x234   :  { %v389_v57 = vmul.f32 %v313_v60, %v583_v9  ;;  %v390_v62 = vmul.f32 %v313_v60, %v585_v10 }
 0x236   :  { %421 = vst [vmem:[#allocation5 + $0x50] sm:$0xff] %v389_v57 }
 0x237   :  { %422 = vst [vmem:[#allocation5 + $0x58] sm:$0xff] %v390_v62 }
 0x23b   :  { %v294_v58 = vpop.permute.xlu0 %293  ;;  %v326_v13 = vpop.permute.xlu2 %325 }
 0x23c   :  { %v383_v14 = vmul.f32 %v294_v58, %v569_v2  ;;  %v384_v61 = vmul.f32 %v294_v58, %v573_v4  ;;  %v393_v56 = vmul.f32 %v326_v13, %v601_v18  ;;  %v281_v11 = vpop.permute.xlu1 %280  ;;  %v394_v12 = vmul.f32 %v326_v13, %v607_v21 }
 0x23d   :  { %v379_v63 = vmul.f32 %v281_v11, %v575_v5  ;;  %v380_v9 = vmul.f32 %v281_v11, %v577_v6 }
 0x23e   :  { %415 = vst [vmem:[#allocation5 + $0x20] sm:$0xff] %v383_v14 }
 0x23f   :  { %416 = vst [vmem:[#allocation5 + $0x28] sm:$0xff] %v384_v61 }
 0x240   :  { %425 = vst [vmem:[#allocation5 + $0x70] sm:$0xff] %v393_v56 }
 0x241   :  { %426 = vst [vmem:[#allocation5 + $0x78] sm:$0xff] %v394_v12 }
 0x242   :  { %411 = vst [vmem:[#allocation5] sm:$0xff] %v379_v63 }
 0x243   :  { %412 = vst [vmem:[#allocation5 + $0x8] sm:$0xff] %v380_v9 }
 0x244   :  { %v307_v10 = vpop.permute.xlu1 %306 }
 0x245   :  { %v387_v2 = vmul.f32 %v307_v10, %v565_v0  ;;  %v388_v4 = vmul.f32 %v307_v10, %v567_v1 }
 0x247   :  { %419 = vst [vmem:[#allocation5 + $0x40] sm:$0xff] %v387_v2 }
 0x248   :  { %420 = vst [vmem:[#allocation5 + $0x48] sm:$0xff] %v388_v4 }
 0x24b   :  { %v339_v18 = vpop.permute.xlu0 %338  ;;  %v346_v3 = vpop.permute.xlu2 %345 }
 0x24c   :  { %v397_v21 = vmul.f32 %v339_v18, %v627_v31  ;;  %v398_v5 = vmul.f32 %v339_v18, %v629_v32  ;;  %v399_v8 = vmul.f32 %v346_v3, %v619_v27  ;;  %v320_v6 = vpop.permute.xlu1 %319  ;;  %v400_v15 = vmul.f32 %v346_v3, %v625_v30 }
 0x24d   :  { %v391_v17 = vmul.f32 %v320_v6, %v609_v22  ;;  %v392_v0 = vmul.f32 %v320_v6, %v611_v23 }
 0x24e   :  { %429 = vst [vmem:[#allocation5 + $0x90] sm:$0xff] %v397_v21 }
 0x24f   :  { %430 = vst [vmem:[#allocation5 + $0x98] sm:$0xff] %v398_v5 }
 0x250   :  { %431 = vst [vmem:[#allocation5 + $0xa0] sm:$0xff] %v399_v8 }
 0x251   :  { %432 = vst [vmem:[#allocation5 + $0xa8] sm:$0xff] %v400_v15 }
 0x252   :  { %423 = vst [vmem:[#allocation5 + $0x60] sm:$0xff] %v391_v17 }
 0x253   :  { %424 = vst [vmem:[#allocation5 + $0x68] sm:$0xff] %v392_v0  ;;  %v359_v1 = vpop.permute.xlu2 %358 }
 0x254   :  { %v403_v31 = vmul.f32 %v359_v1, %v645_v40  ;;  %v404_v32 = vmul.f32 %v359_v1, %v647_v41  ;;  %v333_v24 = vpop.permute.xlu1 %332 }
 0x255   :  { %v395_v27 = vmul.f32 %v333_v24, %v603_v19  ;;  %v396_v30 = vmul.f32 %v333_v24, %v605_v20 }
 0x256   :  { %435 = vst [vmem:[#allocation5 + $0xc0] sm:$0xff] %v403_v31 }
 0x257   :  { %436 = vst [vmem:[#allocation5 + $0xc8] sm:$0xff] %v404_v32 }
 0x258   :  { %427 = vst [vmem:[#allocation5 + $0x80] sm:$0xff] %v395_v27 }
 0x259   :  { %428 = vst [vmem:[#allocation5 + $0x88] sm:$0xff] %v396_v30 }
 0x25b   :  { %v372_v22 = vpop.permute.xlu0 %371 }
 0x25c   :  { %v407_v23 = vmul.f32 %v372_v22, %v639_v37  ;;  %v408_v25 = vmul.f32 %v372_v22, %v641_v38 }
 0x25e   :  { %439 = vst [vmem:[#allocation5 + $0xe0] sm:$0xff] %v407_v23 }
 0x25f   :  { %440 = vst [vmem:[#allocation5 + $0xe8] sm:$0xff] %v408_v25 }
 0x263   :  { %v378_v26 = vpop.permute.xlu2 %377 }
 0x264   :  { %v409_v40 = vmul.f32 %v378_v26, %v655_v45  ;;  %v410_v41 = vmul.f32 %v378_v26, %v657_v46  ;;  %v352_v7 = vpop.permute.xlu1 %351 }
 0x265   :  { %v401_v19 = vmul.f32 %v352_v7, %v621_v28  ;;  %v402_v20 = vmul.f32 %v352_v7, %v623_v29 }
 0x266   :  { %441 = vst [vmem:[#allocation5 + $0xf0] sm:$0xff] %v409_v40 }
 0x267   :  { %442 = vst [vmem:[#allocation5 + $0xf8] sm:$0xff] %v410_v41 }
 0x268   :  { %433 = vst [vmem:[#allocation5 + $0xb0] sm:$0xff] %v401_v19 }
 0x269   :  { %434 = vst [vmem:[#allocation5 + $0xb8] sm:$0xff] %v402_v20 }
 0x26c   :  { %v365_v37 = vpop.permute.xlu1 %364 }
 0x26d   :  { %v405_v38 = vmul.f32 %v365_v37, %v637_v36  ;;  %v406_v45 = vmul.f32 %v365_v37, %v643_v39 }
 0x26f   :  { %437 = vst [vmem:[#allocation5 + $0xd0] sm:$0xff] %v405_v38 }
 0x270   :  { %438 = vst [vmem:[#allocation5 + $0xd8] sm:$0xff] %v406_v45 }
 0x271   :  { %455 = dma.vmem_to_hbm [thread:$0]  %s448_s23, 4096, %s450_s26, [#allocation4], %s536_s17, %s536_s17, %s537_s18  }
 0x272   :  { %533 = dma.done.wait [#allocation4], 4096  }
 0x273   :  { %534 = vsyncadd [#allocation4], 4294963200 }
 0x274   :  { %460 = vsyncpa [#allocation3], 1 }
 0x275   :  { %461 = vsyncpa [#allocation4], 1 }

</bundles_post_ra>
